<compile_context>
chip_gen: v7x
topology: tpu7x:2x2x1
jax: 0.10.0
libtpu: 0.0.40
codegen_flags: <defaults>
</compile_context>

<pallas_src>
import jax
import jax.numpy as jnp
from jax import lax
from jax.experimental import pallas as pl
from jax.experimental.pallas import tpu as pltpu


def _make_kernel(tile_l, tiles_per_split, l_actual, l_pad):
    """Builds the conv1..conv3 + masked-sum accumulation kernel."""
    need_mask = (l_pad != l_actual)

    def kernel(h0_ref, w1, b1, w2, b2, w3, b3, out_ref):
        s = pl.program_id(1)
        l = pl.program_id(2)

        # NOTE: correctness of this accumulate-into-output pattern relies on
        # the reduction axis (l) being LAST and "arbitrary" while (b, s) are
        # the outer "parallel" axes.  Do not reorder the grid.
        @pl.when(l == 0)
        def _():
            out_ref[...] = jnp.zeros_like(out_ref)

        # conv1..conv3: bf16 MXU matmuls with f32 accumulation, f32 bias+relu.
        h = h0_ref[...]                                               # (tile_l, 64) bf16
        h = jnp.dot(h, w1[...], preferred_element_type=jnp.float32) + b1[...]
        h = jnp.maximum(h, 0.0).astype(jnp.bfloat16)
        h = jnp.dot(h, w2[...], preferred_element_type=jnp.float32) + b2[...]
        h = jnp.maximum(h, 0.0).astype(jnp.bfloat16)
        h = jnp.dot(h, w3[...], preferred_element_type=jnp.float32) + b3[...]
        h = jnp.maximum(h, 0.0)                                       # (tile_l, 128) f32

        if need_mask:
            # Zero out padded sequence positions before the reduction.
            pos = ((s * tiles_per_split + l) * tile_l
                   + lax.broadcasted_iota(jnp.int32, (tile_l, 1), 0))
            h = jnp.where(pos < l_actual, h, 0.0)

        # Per-sublane partial sums (unmasked VALU adds); the cross-sublane
        # reduce to (1, 128) happens once in the wrapper.
        out_ref[...] += h.reshape(tile_l // 8, 8, h.shape[-1]).sum(axis=0)

    return kernel


def init_params(key, in_channels, filters=(64, 64, 128, 128, 128)):
    """Deterministic params; conv/fc weights stored as (fan_in, fan_out)."""
    params = []
    chans = [in_channels] + list(filters)
    n_keys = 2 * len(filters) + 4
    keys = jax.random.split(key, n_keys)
    k = 0
    for i in range(len(filters)):
        fan_in, fan_out = chans[i], chans[i + 1]
        bound = 1.0 / jnp.sqrt(fan_in)
        w = jax.random.uniform(keys[k], (fan_in, fan_out), jnp.float32, -bound, bound); k += 1
        b = jax.random.uniform(keys[k], (1, fan_out), jnp.float32, -bound, bound); k += 1
        params += [w, b]
    # fc1: Linear(filters[-1], 100)
    bound = 1.0 / jnp.sqrt(filters[-1])
    params += [jax.random.uniform(keys[k], (filters[-1], 100), jnp.float32, -bound, bound)]; k += 1
    params += [jax.random.uniform(keys[k], (1, 100), jnp.float32, -bound, bound)]; k += 1
    # fc2: Linear(100, 1)
    bound = 1.0 / jnp.sqrt(100.0)
    params += [jax.random.uniform(keys[k], (100, 1), jnp.float32, -bound, bound)]; k += 1
    params += [jax.random.uniform(keys[k], (1, 1), jnp.float32, -bound, bound)]; k += 1
    return params


def fully_convolutional(x_ncl, params, *, tile_l=None, n_splits=None):
    """x_ncl: (N, C_in, L) like the PyTorch Conv1d input. Returns (N, 1) f32."""
    (w0, b0, w1, b1, w2, b2, w3, b3, w4, b4, fw1, fb1, fw2, fb2) = params
    N, C, L = x_ncl.shape
    c_mid = w1.shape[0]        # 64
    c_out = w4.shape[0]        # 128

    # Tile selection: big tiles amortize the ~0.35us per-grid-step overhead;
    # no divisibility requirement (pad + in-kernel mask handles ragged L).
    if tile_l is None:
        tile_l = min(2048, ((L + 7) // 8) * 8)
    tile_l = max(8, (tile_l // 8) * 8)
    assert tile_l % 8 == 0

    n_tiles = pl.cdiv(L, tile_l)
    if n_splits is None:
        # v7x has 2 TensorCores; when the batch axis can't fill both, split L.
        n_splits = 2 if (N % 2 == 1 and n_tiles >= 2) else 1
    tiles_per_split = pl.cdiv(n_tiles, n_splits)
    l_pad = n_splits * tiles_per_split * tile_l

    # conv0 + relu hoisted to XLA (K=4 is hostile to lane layout / MXU width).
    x_mat = jnp.transpose(x_ncl, (0, 2, 1)).reshape(N * L, C)
    h0 = jnp.maximum(x_mat @ w0 + b0, 0.0).astype(jnp.bfloat16).reshape(N, L, c_mid)
    if l_pad != L:
        h0 = jnp.pad(h0, ((0, 0), (0, l_pad - L), (0, 0)))

    # bf16 MXU operands for the conv stack; biases stay f32.
    w1b, w2b, w3b = (w.astype(jnp.bfloat16) for w in (w1, w2, w3))
    weights = [w1b, b1, w2b, b2, w3b, b3]

    def _resident(w):
        # Full-array block, constant block index -> stays VMEM-resident.
        return pl.BlockSpec(w.shape, lambda b, s, l: (0,) * w.ndim)

    kernel = _make_kernel(tile_l, tiles_per_split, L, l_pad)
    grid = (N, n_splits, tiles_per_split)

    flops = 2 * N * l_pad * (c_mid * c_mid * 2 + c_mid * c_out)
    bytes_accessed = (N * l_pad * c_mid * 2                     # bf16 activations in
                      + sum(int(w.size) * w.dtype.itemsize for w in weights)
                      + N * n_splits * 8 * c_out * 4)           # f32 partial sums out

    partial = pl.pallas_call(
        kernel,
        out_shape=jax.ShapeDtypeStruct((N, n_splits, 8, c_out), jnp.float32),
        grid_spec=pltpu.PrefetchScalarGridSpec(
            num_scalar_prefetch=0,
            grid=grid,
            in_specs=[pl.BlockSpec((None, tile_l, c_mid),
                                   lambda b, s, l: (b, s * tiles_per_split + l, 0))]
                     + [_resident(w) for w in weights],
            out_specs=pl.BlockSpec((None, None, 8, c_out),
                                   lambda b, s, l: (b, s, 0, 0)),
        ),
        compiler_params=pltpu.CompilerParams(
            dimension_semantics=("parallel", "parallel", "arbitrary"),
            vmem_limit_bytes=32 * 1024 * 1024),
        cost_estimate=pl.CostEstimate(flops=flops, transcendentals=0,
                                      bytes_accessed=bytes_accessed),
    )(h0, *weights)

    # Combine partial sums: splits + sublanes -> per-batch channel sums.
    s_sum = partial.sum(axis=(1, 2))                   # (N, 128) f32
    # conv4 deferred by linearity: sum_L(h3 @ w4 + b4) = (sum_L h3) @ w4 + L*b4.
    s4 = s_sum @ w4 + float(L) * b4                    # (N, 128)
    z = jnp.maximum(s4 @ fw1 + fb1, 0.0)               # (N, 100)
    return z @ fw2 + fb2                               # (N, 1)


def _reference_f32(x_ncl, params):
    """Pure-JAX f32 reference of the intended PyTorch forward."""
    w0, b0, w1, b1, w2, b2, w3, b3, w4, b4, fw1, fb1, fw2, fb2 = params
    N, C, L = x_ncl.shape
    h = jnp.transpose(x_ncl, (0, 2, 1)).reshape(N * L, C)
    h = jnp.maximum(h @ w0 + b0, 0.0)
    h = jnp.maximum(h @ w1 + b1, 0.0)
    h = jnp.maximum(h @ w2 + b2, 0.0)
    h = jnp.maximum(h @ w3 + b3, 0.0)
    h = h @ w4 + b4                                    # 'linear' activation
    s = h.reshape(N, L, -1).sum(axis=1)
    z = jnp.maximum(s @ fw1 + fb1, 0.0)
    return z @ fw2 + fb2


def _reference_mixed(x_ncl, params):
    """Mirrors kernel precision: bf16 MXU ops for conv1-3 (f32 accum), f32
    deferred conv4 / fc on the summed features."""
    w0, b0, w1, b1, w2, b2, w3, b3, w4, b4, fw1, fb1, fw2, fb2 = params
    N, C, L = x_ncl.shape

    def bdot(a, w):
        return jnp.dot(a.astype(jnp.bfloat16), w.astype(jnp.bfloat16),
                       preferred_element_type=jnp.float32)

    h = jnp.transpose(x_ncl, (0, 2, 1)).reshape(N * L, C)
    h = jnp.maximum(h @ w0 + b0, 0.0).astype(jnp.bfloat16)
    h = jnp.maximum(bdot(h, w1) + b1, 0.0).astype(jnp.bfloat16)
    h = jnp.maximum(bdot(h, w2) + b2, 0.0).astype(jnp.bfloat16)
    h = jnp.maximum(bdot(h, w3) + b3, 0.0)
    s = h.reshape(N, L, -1).sum(axis=1)
    s4 = s @ w4 + float(L) * b4
    z = jnp.maximum(s4 @ fw1 + fb1, 0.0)
    return z @ fw2 + fb2


if __name__ == "__main__":
    key = jax.random.PRNGKey(0)
    kx1, kx2, kp = jax.random.split(key, 3)

    C_IN = 4
    params = init_params(kp, C_IN)

    # Case 1: even batch -> n_splits=1; two L tiles exercise the accumulate path.
    N1, L1 = 2, 16
    x1 = jax.random.normal(kx1, (N1, C_IN, L1), jnp.float32)
    out1 = jax.block_until_ready(fully_convolutional(x1, params, tile_l=8))
    assert out1.shape == (N1, 1), out1.shape
    ref1_m = _reference_mixed(x1, params)
    ref1_f = _reference_f32(x1, params)
    assert jnp.allclose(out1, ref1_m, atol=1e-3, rtol=1e-3), (out1, ref1_m)
    assert jnp.allclose(out1, ref1_f, atol=1e-1, rtol=1e-1), (out1, ref1_f)

    # Case 2: odd batch + ragged L -> n_splits=2 (megacore split) + tail masking.
    N2, L2 = 1, 20
    x2 = jax.random.normal(kx2, (N2, C_IN, L2), jnp.float32)
    out2 = jax.block_until_ready(fully_convolutional(x2, params, tile_l=8))
    assert out2.shape == (N2, 1), out2.shape
    ref2_m = _reference_mixed(x2, params)
    ref2_f = _reference_f32(x2, params)
    assert jnp.allclose(out2, ref2_m, atol=1e-3, rtol=1e-3), (out2, ref2_m)
    assert jnp.allclose(out2, ref2_f, atol=1e-1, rtol=1e-1), (out2, ref2_f)

    print("KERNEL_OK")
</pallas_src>

<mosaic_0001>
module attributes {stable_mosaic.version = 11 : i64} {
  func.func @kernel(%arg0: i32, %arg1: i32, %arg2: i32, %arg3: memref<1x8x64xbf16, #tpu.memory_space<vmem>>, %arg4: memref<64x64xbf16, #tpu.memory_space<vmem>>, %arg5: memref<1x64xf32, #tpu.memory_space<vmem>>, %arg6: memref<64x128xbf16, #tpu.memory_space<vmem>>, %arg7: memref<1x128xf32, #tpu.memory_space<vmem>>, %arg8: memref<128x128xbf16, #tpu.memory_space<vmem>>, %arg9: memref<1x128xf32, #tpu.memory_space<vmem>>, %arg10: memref<1x1x8x128xf32, #tpu.memory_space<vmem>>) attributes {dimension_semantics = [#tpu.dimension_semantics<parallel>, #tpu.dimension_semantics<parallel>, #tpu.dimension_semantics<arbitrary>], iteration_bounds = array<i64: 2, 1, 2>, scalar_prefetch = 0 : i64, scratch_operands = 0 : i64, tpu.core_type = #tpu.core_type<tc>, window_params = [{transform_indices = @transform_0, window_bounds = array<i64: 1, 8, 64>}, {pipeline_mode = #tpu.pipeline_mode<synchronous>, transform_indices = @transform_1, window_bounds = array<i64: 64, 64>}, {pipeline_mode = #tpu.pipeline_mode<synchronous>, transform_indices = @transform_2, window_bounds = array<i64: 1, 64>}, {pipeline_mode = #tpu.pipeline_mode<synchronous>, transform_indices = @transform_3, window_bounds = array<i64: 64, 128>}, {pipeline_mode = #tpu.pipeline_mode<synchronous>, transform_indices = @transform_4, window_bounds = array<i64: 1, 128>}, {pipeline_mode = #tpu.pipeline_mode<synchronous>, transform_indices = @transform_5, window_bounds = array<i64: 128, 128>}, {pipeline_mode = #tpu.pipeline_mode<synchronous>, transform_indices = @transform_6, window_bounds = array<i64: 1, 128>}, {transform_indices = @transform_7, window_bounds = array<i64: 1, 1, 8, 128>}]} {
    %c0_i32 = arith.constant 0 : i32
    %0 = arith.cmpi eq, %arg2, %c0_i32 : i32
    %1 = arith.extui %0 : i1 to i32
    %c0_i32_0 = arith.constant 0 : i32
    %2 = arith.cmpi ne, %1, %c0_i32_0 : i32
    scf.if %2 {
      %cst_29 = arith.constant 0.000000e+00 : f32
      %36 = vector.broadcast %cst_29 : f32 to vector<8x128xf32>
      %c0_30 = arith.constant 0 : index
      %c0_31 = arith.constant 0 : index
      %c0_32 = arith.constant 0 : index
      %c0_33 = arith.constant 0 : index
      %37 = vector.load %arg10[%c0_30, %c0_31, %c0_32, %c0_33] : memref<1x1x8x128xf32, #tpu.memory_space<vmem>>, vector<1x1x8x128xf32>
      %38 = vector.shape_cast %37 : vector<1x1x8x128xf32> to vector<8x128xf32>
      %39 = vector.shape_cast %36 : vector<8x128xf32> to vector<1x1x8x128xf32>
      tpu.vector_store %arg10[%c0_30, %c0_31, %c0_32, %c0_33], %39 {strides = array<i32>} : memref<1x1x8x128xf32, #tpu.memory_space<vmem>>, vector<1x1x8x128xf32>,
    } else {
    }
    %c0 = arith.constant 0 : index
    %c0_1 = arith.constant 0 : index
    %c0_2 = arith.constant 0 : index
    %3 = vector.load %arg3[%c0, %c0_1, %c0_2] : memref<1x8x64xbf16, #tpu.memory_space<vmem>>, vector<1x8x64xbf16>
    %4 = vector.shape_cast %3 : vector<1x8x64xbf16> to vector<8x64xbf16>
    %c0_3 = arith.constant 0 : index
    %c0_4 = arith.constant 0 : index
    %5 = vector.load %arg4[%c0_3, %c0_4] : memref<64x64xbf16, #tpu.memory_space<vmem>>, vector<64x64xbf16>
    %cst = arith.constant dense<0.000000e+00> : vector<8x64xf32>
    %6 = tpu.matmul %4, %5, %cst {dimension_numbers = #tpu.dot_dimension_numbers<[1], [0], [0], [1], [0, 0, 1, 1], [], []>} : vector<8x64xbf16>, vector<64x64xbf16>, vector<8x64xf32> -> vector<8x64xf32>
    %c0_5 = arith.constant 0 : index
    %c0_6 = arith.constant 0 : index
    %7 = vector.load %arg5[%c0_5, %c0_6] : memref<1x64xf32, #tpu.memory_space<vmem>>, vector<1x64xf32>
    %8 = vector.broadcast %7 : vector<1x64xf32> to vector<8x64xf32>
    %9 = arith.addf %6, %8 : vector<8x64xf32>
    %cst_7 = arith.constant 0.000000e+00 : f32
    %10 = vector.broadcast %cst_7 : f32 to vector<8x64xf32>
    %11 = arith.maximumf %9, %10 : vector<8x64xf32>
    %12 = arith.truncf %11 : vector<8x64xf32> to vector<8x64xbf16>
    %c0_8 = arith.constant 0 : index
    %c0_9 = arith.constant 0 : index
    %13 = vector.load %arg6[%c0_8, %c0_9] : memref<64x128xbf16, #tpu.memory_space<vmem>>, vector<64x128xbf16>
    %cst_10 = arith.constant dense<0.000000e+00> : vector<8x128xf32>
    %14 = tpu.matmul %12, %13, %cst_10 {dimension_numbers = #tpu.dot_dimension_numbers<[1], [0], [0], [1], [0, 0, 1, 1], [], []>} : vector<8x64xbf16>, vector<64x128xbf16>, vector<8x128xf32> -> vector<8x128xf32>
    %c0_11 = arith.constant 0 : index
    %c0_12 = arith.constant 0 : index
    %15 = vector.load %arg7[%c0_11, %c0_12] : memref<1x128xf32, #tpu.memory_space<vmem>>, vector<1x128xf32>
    %16 = vector.broadcast %15 : vector<1x128xf32> to vector<8x128xf32>
    %17 = arith.addf %14, %16 : vector<8x128xf32>
    %cst_13 = arith.constant 0.000000e+00 : f32
    %18 = vector.broadcast %cst_13 : f32 to vector<8x128xf32>
    %19 = arith.maximumf %17, %18 : vector<8x128xf32>
    %20 = arith.truncf %19 : vector<8x128xf32> to vector<8x128xbf16>
    %c0_14 = arith.constant 0 : index
    %c0_15 = arith.constant 0 : index
    %21 = vector.load %arg8[%c0_14, %c0_15] : memref<128x128xbf16, #tpu.memory_space<vmem>>, vector<128x128xbf16>
    %cst_16 = arith.constant dense<0.000000e+00> : vector<8x128xf32>
    %22 = tpu.matmul %20, %21, %cst_16 {dimension_numbers = #tpu.dot_dimension_numbers<[1], [0], [0], [1], [0, 0, 1, 1], [], []>} : vector<8x128xbf16>, vector<128x128xbf16>, vector<8x128xf32> -> vector<8x128xf32>
    %c0_17 = arith.constant 0 : index
    %c0_18 = arith.constant 0 : index
    %23 = vector.load %arg9[%c0_17, %c0_18] : memref<1x128xf32, #tpu.memory_space<vmem>>, vector<1x128xf32>
    %24 = vector.broadcast %23 : vector<1x128xf32> to vector<8x128xf32>
    %25 = arith.addf %22, %24 : vector<8x128xf32>
    %cst_19 = arith.constant 0.000000e+00 : f32
    %26 = vector.broadcast %cst_19 : f32 to vector<8x128xf32>
    %27 = arith.maximumf %25, %26 : vector<8x128xf32>
    %c0_20 = arith.constant 0 : index
    %c0_21 = arith.constant 0 : index
    %c0_22 = arith.constant 0 : index
    %c0_23 = arith.constant 0 : index
    %28 = vector.load %arg10[%c0_20, %c0_21, %c0_22, %c0_23] : memref<1x1x8x128xf32, #tpu.memory_space<vmem>>, vector<1x1x8x128xf32>
    %29 = vector.shape_cast %28 : vector<1x1x8x128xf32> to vector<8x128xf32>
    %30 = vector.shape_cast %27 : vector<8x128xf32> to vector<1x8x128xf32>
    %cst_24 = arith.constant dense<0.000000e+00> : vector<8x128xf32>
    %31 = vector.multi_reduction <add>, %30, %cst_24 [0] : vector<1x8x128xf32> to vector<8x128xf32>
    %32 = arith.addf %29, %31 : vector<8x128xf32>
    %c0_25 = arith.constant 0 : index
    %c0_26 = arith.constant 0 : index
    %c0_27 = arith.constant 0 : index
    %c0_28 = arith.constant 0 : index
    %33 = vector.load %arg10[%c0_25, %c0_26, %c0_27, %c0_28] : memref<1x1x8x128xf32, #tpu.memory_space<vmem>>, vector<1x1x8x128xf32>
    %34 = vector.shape_cast %33 : vector<1x1x8x128xf32> to vector<8x128xf32>
    %35 = vector.shape_cast %32 : vector<8x128xf32> to vector<1x1x8x128xf32>
    tpu.vector_store %arg10[%c0_25, %c0_26, %c0_27, %c0_28], %35 {strides = array<i32>} : memref<1x1x8x128xf32, #tpu.memory_space<vmem>>, vector<1x1x8x128xf32>,
    return
  }
  func.func @transform_0(%arg0: i32, %arg1: i32, %arg2: i32) -> (i32, i32, i32) {
    %c2_i32 = arith.constant 2 : i32
    %0 = arith.muli %arg1, %c2_i32 : i32
    %1 = arith.addi %0, %arg2 : i32
    %c0_i32 = arith.constant 0 : i32
    %c0_i32_0 = arith.constant 0 : i32
    return %arg0, %1, %c0_i32 : i32, i32, i32
  }
  func.func @transform_1(%arg0: i32, %arg1: i32, %arg2: i32) -> (i32, i32) {
    %c0_i32 = arith.constant 0 : i32
    %c0_i32_0 = arith.constant 0 : i32
    %c0_i32_1 = arith.constant 0 : i32
    return %c0_i32, %c0_i32_0 : i32, i32
  }
  func.func @transform_2(%arg0: i32, %arg1: i32, %arg2: i32) -> (i32, i32) {
    %c0_i32 = arith.constant 0 : i32
    %c0_i32_0 = arith.constant 0 : i32
    %c0_i32_1 = arith.constant 0 : i32
    return %c0_i32, %c0_i32_0 : i32, i32
  }
  func.func @transform_3(%arg0: i32, %arg1: i32, %arg2: i32) -> (i32, i32) {
    %c0_i32 = arith.constant 0 : i32
    %c0_i32_0 = arith.constant 0 : i32
    %c0_i32_1 = arith.constant 0 : i32
    return %c0_i32, %c0_i32_0 : i32, i32
  }
  func.func @transform_4(%arg0: i32, %arg1: i32, %arg2: i32) -> (i32, i32) {
    %c0_i32 = arith.constant 0 : i32
    %c0_i32_0 = arith.constant 0 : i32
    %c0_i32_1 = arith.constant 0 : i32
    return %c0_i32, %c0_i32_0 : i32, i32
  }
  func.func @transform_5(%arg0: i32, %arg1: i32, %arg2: i32) -> (i32, i32) {
    %c0_i32 = arith.constant 0 : i32
    %c0_i32_0 = arith.constant 0 : i32
    %c0_i32_1 = arith.constant 0 : i32
    return %c0_i32, %c0_i32_0 : i32, i32
  }
  func.func @transform_6(%arg0: i32, %arg1: i32, %arg2: i32) -> (i32, i32) {
    %c0_i32 = arith.constant 0 : i32
    %c0_i32_0 = arith.constant 0 : i32
    %c0_i32_1 = arith.constant 0 : i32
    return %c0_i32, %c0_i32_0 : i32, i32
  }
  func.func @transform_7(%arg0: i32, %arg1: i32, %arg2: i32) -> (i32, i32, i32, i32) {
    %c0_i32 = arith.constant 0 : i32
    %c0_i32_0 = arith.constant 0 : i32
    %c0_i32_1 = arith.constant 0 : i32
    return %arg0, %arg1, %c0_i32, %c0_i32_0 : i32, i32, i32, i32
  }
}

</mosaic_0001>

<bundles_post_ra>
// kernel: tpu_custom_call.1
= control target key start
LH: loop header
LB: loop body
LE: loop exit
PB: predicated region body
PF: predicated region fallthrough
CT: control target
= control target key end

     0   :  { %s1701_s0 = inlined_call_operand.hbm [shape: bf16[2,16,64], index: 0, kind: input, shape index: {}]   ;;  %s1702_s1 = inlined_call_operand.hbm [shape: bf16[64,64], index: 1, kind: input, shape index: {}]   ;;  %s1703_s2 = inlined_call_operand.vmem [shape: f32[1,64], index: 2, kind: input, shape index: {}]   ;;  %s1704_s3 = inlined_call_operand.hbm [shape: bf16[64,128], index: 3, kind: input, shape index: {}]   ;;  %s1705_s4 = inlined_call_operand.vmem [shape: f32[1,128], index: 4, kind: input, shape index: {}]   ;;  %s1706_s5 = inlined_call_operand.hbm [shape: bf16[128,128], index: 5, kind: input, shape index: {}]   ;;  %s1707_s6 = inlined_call_operand.vmem [shape: f32[1,128], index: 6, kind: input, shape index: {}]   ;;  %s1708_s7 = inlined_call_operand.hbm [shape: f32[2,1,8,128], index: 7, kind: output, shape index: {}]  }
   0x1   :  { %1720 = sst [smem:[#allocation20_spill]] %s1702_s1 }
   0x2   :  { %1721 = sst [smem:[#allocation21_spill]] %s1703_s2 }
   0x3   :  { %1722 = sst [smem:[#allocation22_spill]] %s1704_s3 }
   0x4   :  { %1723 = sst [smem:[#allocation23_spill]] %s1705_s4 }
   0x5   :  { %1724 = sst [smem:[#allocation24_spill]] %s1706_s5 }
   0x6   :  { %1725 = sst [smem:[#allocation25_spill]] %s1707_s6 }
   0x7   :  { %1726 = sst [smem:[#allocation26_spill]] %s1708_s7 }
   0x8   :  { %12 = vsyncpa [#allocation3], 0 }
   0x9   :  { %14 = vsyncpa [#allocation3 + $0x1], 0 }
   0xa   :  { %15 = vsyncpa [#allocation6], 0 }
   0xb   :  { %16 = vsyncpa [#allocation9], 0 }
   0xc   :  { %17 = vsyncpa [#allocation4], 0 }
   0xd   :  { %19 = vsyncpa [#allocation4 + $0x1], 0  ;;  %s1351_s24 = smov 0   ;;  %s1353_s25 = smov 0  }
   0xe   :  { %s1355_s26 = smov 0   ;;  %s1357_s27 = smov 0  }
   0xf   :  { %s1359_s28 = smov 0   ;;  %s1361_s29 = smov 0  }
  0x10   :  { %s1363_s30 = smov 0   ;;  %s1365_s8 = smov 0  }
  0x11   :  { %s1367_s9 = smov 0   ;;  %s1369_s10 = smov 0  }
  0x12   :  { %s1371_s11 = smov 0  }
  0x13 LB: > { %1727 = sst [smem:[#allocation15_spill]] %s1259_s24  ;;  %s796_s12 = sadd.s32 4294967295, %s1299_s11   ;;  %s1299_s11 = sphi %s1371_s11, %s25_s11   ;;  %s1295_s10 = sphi %s1369_s10, %s1768_s10   ;;  %s1291_s9 = sphi %s1367_s9, %s1767_s9   ;;  %s1287_s8 = sphi %s1365_s8, %s1766_s8   ;;  %s1283_s30 = sphi %s1363_s30, %s1765_s30   ;;  %s1279_s29 = sphi %s1361_s29, %s1764_s29   ;;  %s1275_s28 = sphi %s1359_s28, %s1763_s28   ;;  %s1271_s27 = sphi %s1357_s27, %s1762_s27   ;;  %s1267_s26 = sphi %s1355_s26, %s1761_s26   ;;  %s1263_s25 = sphi %s1353_s25, %s1760_s25   ;;  %s1259_s24 = sphi %s1351_s24, %s1759_s24  }
  0x14   : > { %1728 = sst [smem:[#allocation16_spill]] %s1287_s8  ;;  %s797_s13 = sadd.s32 4294967294, %s1299_s11  }
  0x15   : > { %p70_p0 = scmp.ne.s32.totalorder %s1275_s28, %s1271_s27  ;;  %p1407_p1 = scmp.eq.s32.totalorder %s796_s12, 0 }
  0x16   : > { %p221_p2 = scmp.ne.s32.totalorder %s1267_s26, %s1263_s25  ;;  %p222_p3 = scmp.eq.s32.totalorder %s796_s12, 3 }
  0x17   : > { %s1729_s14 = scalar_select %p1407_p1, 1, 0 }
  0x18   : > { %p1415_p4 = por %p1407_p1, %p70_p0  ;;  %p227_p5 = scmp.ne.s32.totalorder %s1263_s25, %s1259_s24 }
  0x19   : > { %p1421_p6 = por %p222_p3, %p221_p2  ;;  %p228_p7 = scmp.eq.s32.totalorder %s797_s13, 3 }
  0x1a   : > { %s1730_s15 = scalar_select %p1415_p4, 1, 0 }
  0x1b   : > { %s1731_s16 = scalar_select %p1421_p6, 1, 0 }
  0x1c   : > { %p798_p8 = scmp.ge.s32.totalorder %s1299_s11, 1  ;;  %p235_p9 = scmp.lt.s32.totalorder %s1299_s11, 5 }
  0x1d   : > { %1732 = sst [smem:[#allocation17_spill]] %s1731_s16  ;;  %p1427_p10 = por %p228_p7, %p227_p5 }
  0x1e   : > { %p1431_p11 = pnand %p798_p8, %p235_p9  ;;  %s1301_s19 = smov [#allocation5]  }
  0x1f   : > { %s1733_s17 = scalar_select %p1427_p10, 1, 0 }
  0x20   : > { %s1735_s18 = scalar_select %p1431_p11, 1, 0 }
  0x21   : > { %1734 = sst [smem:[#allocation18_spill]] %s1733_s17  ;;  %s247_s20 = sshll.u32 %s1301_s19, 4  ;;  %s248_s20 = int_to_ptr.vmem [resolvable:$true] %s247_s20 }
  0x22   : > { %p917_p12 = pneg %p1431_p11  ;;  %s1302_s22 = smov [#allocation7]  }
  0x23   : > { %s263_s23 = sshll.u32 %s1302_s22, 4  ;;  %s1737_s1 = sld [smem:[#allocation20_spill]]  ;;  %s1443_s23 = int_to_ptr.vmem [resolvable:$true] %s263_s23 }
  0x24   : > { %p1439_p13 = pnand %p917_p12, %p1407_p1 }
  0x26   : > { %p1453_p2 = pneg %p1439_p13 }
  0x29   : > { %s1055_s13 = scalar_lea.hbm %s1737_s1, 512 }
  0x2a   : > { %p1056_p0 = scmp.ne.s32.totalorder %s1737_s1, %s1055_s13  ;;  %p1062_p7 = scmp.lt.u32.totalorder %s1055_s13, %s1737_s1 }
  0x2c   : > { %p1058_p3 = pnand %p1453_p2, %p1056_p0 }
  0x2e   : > { %p1059_p5 = pneg %p1058_p3 }
  0x30   : > { %p1064_p8 = pnand %p1062_p7, %p1059_p5 }
  0x32   : > { %1067 = shalt.err (!%p1064_p8)
}
  0x33   : > { %s1068_s27 = scalar_lea.vmem %s248_s20, 512  ;;  %p1076_p6 = scmp.lt.s32.totalorder %s248_s20, %s248_s20 }
  0x34   : > { %p1069_p9 = scmp.ne.s32.totalorder %s248_s20, %s1068_s27  ;;  %p1077_p1 = scmp.lt.s32.totalorder %s1068_s27, %s1068_s27 }
  0x36   : > { %p1071_p12 = pnand %p1069_p9, %p1453_p2  ;;  %p1078_p4 = por %p1077_p1, %p1076_p6 }
  0x38   : > { %p1072_p10 = pneg %p1071_p12 }
  0x3a   : > { %p1079_p11 = pnand %p1078_p4, %p1072_p10 }
  0x3c   : > { %1082 = shalt.err (!%p1079_p11)
}
  0x3d   : > { %s1303_s24 = smov 64   ;;  %s1304_s17 = smov 4  }
  0x3e   : > { %920 = dma.hbm_to_vmem [thread:$0]  (!%p1439_p13), %s1737_s1, 512, %s248_s20, [#allocation6], %s1303_s24, %s1303_s24, %s1304_s17  }
  0x3f   : > { %s1739_s3 = sld [smem:[#allocation22_spill]] }
  0x45   : > { %s1083_s16 = scalar_lea.hbm %s1739_s3, 512 }
  0x46   : > { %p1084_p1 = scmp.ne.s32.totalorder %s1739_s3, %s1083_s16  ;;  %p1090_p10 = scmp.lt.u32.totalorder %s1083_s16, %s1739_s3 }
  0x48   : > { %p1086_p4 = pnand %p1084_p1, %p1453_p2 }
  0x4a   : > { %p1087_p6 = pneg %p1086_p4 }
  0x4c   : > { %p1092_p11 = pnand %p1090_p10, %p1087_p6 }
  0x4e   : > { %1095 = shalt.err (!%p1092_p11)
}
  0x4f   : > { %s1096_s20 = scalar_lea.vmem %s1443_s23, 512  ;;  %p1104_p7 = scmp.lt.s32.totalorder %s1443_s23, %s1443_s23 }
  0x50   : > { %p1097_p0 = scmp.ne.s32.totalorder %s1443_s23, %s1096_s20  ;;  %p1105_p8 = scmp.lt.s32.totalorder %s1096_s20, %s1096_s20 }
  0x52   : > { %p1099_p3 = pnand %p1097_p0, %p1453_p2  ;;  %p1106_p9 = por %p1105_p8, %p1104_p7 }
  0x54   : > { %p1100_p5 = pneg %p1099_p3 }
  0x56   : > { %p1107_p12 = pnand %p1106_p9, %p1100_p5 }
  0x58   : > { %1110 = shalt.err (!%p1107_p12)
}
  0x59   : > { %923 = dma.hbm_to_vmem [thread:$0]  (!%p1439_p13), %s1739_s3, 512, %s1443_s23, [#allocation6], %s1303_s24, %s1303_s24, %s1304_s17  }
  0x5a   : > { %s1305_s8 = smov [#allocation8]   ;;  %s1740_s5 = sld [smem:[#allocation24_spill]] }
  0x5b   : > { %s279_s16 = sshll.u32 %s1305_s8, 4  ;;  %s280_s16 = int_to_ptr.vmem [resolvable:$true] %s279_s16 }
  0x60   : > { %s1111_s13 = scalar_lea.hbm %s1740_s5, 1024 }
  0x61   : > { %p1112_p1 = scmp.ne.s32.totalorder %s1740_s5, %s1111_s13  ;;  %p1118_p10 = scmp.lt.u32.totalorder %s1111_s13, %s1740_s5 }
  0x63   : > { %p1114_p4 = pnand %p1112_p1, %p1453_p2 }
  0x65   : > { %p1115_p6 = pneg %p1114_p4 }
  0x67   : > { %p1120_p11 = pnand %p1118_p10, %p1115_p6 }
  0x69   : > { %1123 = shalt.err (!%p1120_p11)
}
  0x6a   : > { %s1124_s23 = scalar_lea.vmem %s280_s16, 1024  ;;  %p1132_p7 = scmp.lt.s32.totalorder %s280_s16, %s280_s16 }
  0x6b   : > { %p1125_p0 = scmp.ne.s32.totalorder %s280_s16, %s1124_s23  ;;  %p1133_p8 = scmp.lt.s32.totalorder %s1124_s23, %s1124_s23 }
  0x6d   : > { %p1127_p3 = pnand %p1125_p0, %p1453_p2  ;;  %p1134_p9 = por %p1133_p8, %p1132_p7 }
  0x6f   : > { %p1128_p5 = pneg %p1127_p3 }
  0x71   : > { %p1135_p12 = pnand %p1134_p9, %p1128_p5 }
  0x73   : > { %1138 = shalt.err (!%p1135_p12)
}
  0x74   : > { %926 = dma.hbm_to_vmem [thread:$0]  (!%p1439_p13), %s1740_s5, 1024, %s280_s16, [#allocation9], %s1303_s24, %s1303_s24, %s1304_s17  }
  0x75   : > { %s37_s19 = sadd.s32 1, %s1291_s9  ;;  %s44_s21 = sadd.s32 1, %s1295_s10 }
  0x76   : > { %p38_p2 = scmp.ge.s32.totalorder %s37_s19, 2  ;;  %s57_s6 = sadd.s32 1, %s1279_s29 }
  0x77   : > { %p64_p1 = scmp.ne.s32.totalorder %s1279_s29, %s1275_s28  ;;  %p65_p4 = scmp.eq.s32.totalorder %s1299_s11, 0 }
  0x78   : > { %s1770_s19 = smov (%p38_p2, %s37_s19), 0  ;;  %s1772_s21 = smov (!%p38_p2, %s44_s21), %s1295_s10 }
  0x79   : > { %1741 = sst [smem:[#allocation19_spill]] %s1770_s19  ;;  %s53_s8 = ssub.s32 %s1291_s9, %s1770_s19 }
  0x7a   : > { %p1530_p6 = por %p65_p4, %p64_p1  ;;  %p46_p13 = scmp.ge.s32.totalorder %s1772_s21, 2 }
  0x7b   : > { %s211_s24 = sadd.s32 1, %s1267_s26  ;;  %p938_p10 = scmp.lt.s32.totalorder %s1299_s11, 4 }
  0x7c   : > { %s296_s17 = sand.u32 1, %s1279_s29   ;;  %s1774_s21 = smov (%p46_p13, %s1772_s21), 0 }
  0x7d   : > { %s803_s16 = sshll.u32 %s296_s17, 2  ;;  %s52_s12 = ssub.s32 %s1295_s10, %s1774_s21 }
  0x7e   : > { %s54_s13 = sor.u32 %s53_s8, %s52_s12  ;;  %p209_p11 = scmp.eq.s32.totalorder %s52_s12, 0 }
  0x7f   : > { %p55_p0 = scmp.eq.s32.totalorder %s54_s13, 0  ;;  %s804_s22 = sshll.u32 %s1295_s10, 1 }
  0x80   : > { %s1543_s27 = scalar_select %p209_p11, %s1267_s26, %s211_s24  }
  0x81   : > { %s1546_s20 = scalar_select %p55_p0, %s1279_s29, %s57_s6  }
  0x82   : > { %s307_s23 = sadd.s32 %s1291_s9, %s804_s22  ;;  %s300_s1 = scalar_lea.vmem [#allocation2], %s803_s16 }
  0x83   : > { %s311_s4 = sshll.u32 %s300_s1, 4  ;;  %s805_s3 = sshll.u32 %s307_s23, 6  ;;  %s1549_s4 = int_to_ptr.vmem [resolvable:$true] %s311_s4 }
  0x84   : > { %s1554_s2 = scalar_lea.hbm %s1701_s0, %s805_s3  ;;  %p1560_p3 = pnand %p938_p10, %p1530_p6 }
  0x85   : > { %s297_s8 = scalar_lea.sflag [#allocation3], %s296_s17  ;;  %s1139_s24 = scalar_lea.hbm %s1554_s2, 64 }
  0x86   : > { %p1140_p5 = scmp.ne.s32.totalorder %s1554_s2, %s1139_s24  ;;  %p1141_p7 = pneg %p1560_p3 }
  0x87   : > { %s1144_s19 = scalar_lea.hbm %s1701_s0, 256  ;;  %p1145_p12 = scmp.lt.u32.totalorder %s1554_s2, %s1701_s0 }
  0x88   : > { %p1142_p8 = pnand %p1141_p7, %p1140_p5  ;;  %p1146_p2 = scmp.lt.u32.totalorder %s1144_s19, %s1139_s24 }
  0x89   : > { %p1148_p4 = scmp.lt.u32.totalorder %s1139_s24, %s1554_s2 }
  0x8a   : > { %p1143_p9 = pneg %p1142_p8  ;;  %p1147_p1 = por %p1146_p2, %p1145_p12 }
  0x8c   : > { %p1149_p6 = por %p1148_p4, %p1147_p1 }
  0x8e   : > { %p1150_p13 = pnand %p1149_p6, %p1143_p9 }
  0x90   : > { %1153 = shalt.err (!%p1150_p13)
}
  0x91   : > { %s1154_s17 = scalar_lea.vmem %s1549_s4, 64  ;;  %s1306_s12 = smov [#allocation2]  }
  0x92   : > { %p1155_p10 = scmp.ne.s32.totalorder %s1549_s4, %s1154_s17  ;;  %s1159_s13 = sshll.u32 %s1306_s12, 4  ;;  %s1160_s13 = int_to_ptr.vmem [resolvable:$false] %s1159_s13 }
  0x93   : > { %s1161_s22 = scalar_lea.vmem %s1160_s13, 128  ;;  %p1162_p5 = scmp.lt.s32.totalorder %s1549_s4, %s1160_s13 }
  0x94   : > { %p1157_p11 = pnand %p1155_p10, %p1141_p7  ;;  %p1163_p8 = scmp.lt.s32.totalorder %s1161_s22, %s1154_s17 }
  0x96   : > { %p1158_p0 = pneg %p1157_p11  ;;  %p1164_p12 = por %p1163_p8, %p1162_p5 }
  0x98   : > { %p1165_p2 = pnand %p1164_p12, %p1158_p0 }
  0x9a   : > { %1168 = shalt.err (!%p1165_p2)
}
  0x9b   : > { %930 = dma.hbm_to_vmem [thread:$0]  (!%p1560_p3), %s1554_s2, 64, %s1549_s4, %s297_s8  }
  0x9c   : > { %p1744_p9 = scmp.ne.s32.totalorder %s1735_s18, 0 }
  0x9d   : > { %s322_s23 = sand.u32 (!%p1744_p9), 1, %s1275_s28   ;;  %p1745_p7 = scmp.ne.s32.totalorder (!%p1744_p9), %s1730_s15, 0 }
  0x9e   : > { %320 = sbr.rel (%p1744_p9) target bundleno = 865 (0x361), region = 48  ;;  %s1592_s1 = sshll.u32 (!%p1744_p9), %s322_s23, 2 }
  0x9f   : > { %s323_s24 = scalar_lea.sflag (!%p1744_p9), [#allocation3], %s322_s23  ;;  %s326_s3 = scalar_lea.vmem (!%p1744_p9), [#allocation2], %s1592_s1 }
  0xa5   : > { %1242 = dma.done.wait (%p1745_p7), %s323_s24, 64  }
  0xa6   : > { %1244 = vsyncadd (%p1745_p7), %s323_s24, 4294967232  ;;  %p1746_p1 = scmp.ne.s32.totalorder %s1729_s14, 0 }
  0xa8   : > { %1246 = dma.done.wait (%p1746_p1), [#allocation6], 1024  }
  0xa9   : > { %1248 = vsyncadd (%p1746_p1), [#allocation6], 4294966272 }
  0xaa   : > { %1250 = dma.done.wait (%p1746_p1), [#allocation9], 1024  }
  0xab   : > { %1252 = vsyncadd (%p1746_p1), [#allocation9], 4294966272  ;;  %s366_s2 = sand.u32 1, %s1263_s25   ;;  %p812_p3 = scmp.ne.s32.totalorder %s1283_s30, 0 }
  0xac   : > { %s811_s18 = sshll.u32 %s366_s2, 3  ;;  %v1307_v0 = vmov (!%p812_p3), 0.0  }
  0xad   : > { %s1610_s4 = scalar_lea.vmem [#allocation10], %s811_s18  ;;  %375 = sbr.rel (%p812_p3) target bundleno = 180 (0xb4), region = 68 }
  0xae   : > { %376 = vst [vmem:[%s1610_s4] sm:$0xff] (!%p812_p3), %v1307_v0 }
  0xb4 PF: > { %v1039_v1 = vld [vmem:[#allocation5] sm:$0xff]   ;;  %v1308_v2 = vmov 0.0   ;;  %v1040_v3 = vld [vmem:[#allocation5 + $0x8] sm:$0xff]   ;;  %vm1309_vm0 = vmmov 0   ;;  %v1041_v4 = vld [vmem:[#allocation5 + $0x10] sm:$0xff]   ;;  %vm417_vm1 = vcmask 523264  }
  0xb5   : > { %857 = vmatprep.subr.bf16.mxu1 %v1308_v2  ;;  %881 = vmatprep.subr.bf16.mxu0 %v1308_v2  ;;  %v1042_v5 = vld [vmem:[#allocation5 + $0x18] sm:$0xff]   ;;  %v1043_v7 = vld [vmem:[#allocation7] sm:$0xff]   ;;  %v1044_v8 = vld [vmem:[#allocation7 + $0x8] sm:$0xff]   ;;  %s1747_s15 = sld [smem:[#allocation21_spill]]  ;;  %s1748_s5 = sld [smem:[#allocation23_spill]] }
  0xb6   : > { %858 = vmatpush3.bf16.msra.mxu1 %v1039_v1  ;;  %865 = vmatprep.mubr.msk.bf16.mxu1 %vm1309_vm0, %v1308_v2  ;;  %v377_v6 = vld [vmem:[%s326_s3] sm:$0xf]  ;;  %v1045_v9 = vld [vmem:[#allocation7 + $0x10] sm:$0xff]   ;;  %v1047_v11 = vld [vmem:[#allocation8] sm:$0xff]   ;;  %s1749_s19 = sld [smem:[#allocation16_spill]]  ;;  %s1750_s17 = sld [smem:[#allocation25_spill]] }
  0xb7   : > { %859 = vmatprep.subr.bf16.mxu1 %v1308_v2  ;;  %897 = vmatprep.mubr.msk.bf16.mxu0 %vm1309_vm0, %v1308_v2  ;;  %v1046_v10 = vld [vmem:[#allocation7 + $0x18] sm:$0xff]   ;;  %v1048_v12 = vld [vmem:[#allocation8 + $0x8] sm:$0xff]   ;;  %v1049_v13 = vld [vmem:[#allocation8 + $0x10] sm:$0xff]   ;;  %s1751_s12 = sld [smem:[#allocation17_spill]]  ;;  %s678_s22 = sshll.u32 %s1610_s4, 4  ;;  %s1638_s22 = int_to_ptr.vmem [resolvable:$true] %s678_s22 }
  0xb8   : > { %882 = vmatpush3.bf16.msra.mxu0 %v1047_v11  ;;  %v1050_v14 = vld [vmem:[#allocation8 + $0x18] sm:$0xff]   ;;  %v1051_v15 = vld [vmem:[#allocation8 + $0x20] sm:$0xff]   ;;  %v1052_v16 = vld [vmem:[#allocation8 + $0x28] sm:$0xff]   ;;  %s1752_s24 = sld [smem:[#allocation26_spill]]  ;;  %s664_s30 = scalar_lea.sflag [#allocation4], %s366_s2 }
  0xb9   : > { %883 = vmatprep.subr.bf16.mxu0 %v1308_v2  ;;  %v1053_v25 = vld [vmem:[#allocation8 + $0x30] sm:$0xff]   ;;  %v1054_v26 = vld [vmem:[#allocation8 + $0x38] sm:$0xff]   ;;  %v659_v39 = vld [vmem:[%s1610_s4] sm:$0xff]  ;;  %s1169_s14 = scalar_lea.vmem %s1638_s22, 128 }
  0xba   : > { %860 = vmatpush3.bf16.msra.mxu1 %v1040_v3  ;;  %p1170_p4 = scmp.ne.s32.totalorder %s1638_s22, %s1169_s14 }
  0xbb   : > { %861 = vmatprep.subr.bf16.mxu1 %v1308_v2  ;;  %v813_v17 = vld [vmem:[%s1747_s15] ss:$0 sm:$0xff]  ;;  %s1310_s15 = smov [#allocation10]  }
  0xbc   : > { %884 = vmatpush3.bf16.msra.mxu0 %v1048_v12  ;;  %v819_v27 = vld [vmem:[%s1748_s5] ss:$0 sm:$0xff]  ;;  %s835_s13 = sshll.u32 %s1749_s19, 7  ;;  %s1173_s6 = sshll.u32 %s1310_s15, 4  ;;  %s1174_s6 = int_to_ptr.vmem [resolvable:$false] %s1173_s6 }
  0xbd   : > { %885 = vmatprep.subr.bf16.mxu0 %v1308_v2  ;;  %v825_v35 = vld [vmem:[%s1750_s17] ss:$0 sm:$0xff]  ;;  %p1754_p6 = scmp.ne.s32.totalorder %s1751_s12, 0  ;;  %s1175_s8 = scalar_lea.vmem %s1174_s6, 256 }
  0xbe   : > { %862 = vmatpush3.bf16.msra.mxu1 %v1041_v4  ;;  %s1753_s3 = smov %s1752_s24  ;;  %s1636_s18 = scalar_lea.hbm %s1752_s24, %s835_s13 }
  0xbf   : > { %863 = vmatprep.subr.bf16.mxu1 %v1308_v2  ;;  %p1171_p13 = pnand %p1170_p4, %p1754_p6  ;;  %p1176_p11 = scmp.lt.s32.totalorder %s1638_s22, %s1174_s6 }
  0xc0   : > { %886 = vmatpush3.bf16.msra.mxu0 %v1049_v13  ;;  %p1177_p0 = scmp.lt.s32.totalorder %s1175_s8, %s1169_s14 }
  0xc1   : > { %887 = vmatprep.subr.bf16.mxu0 %v1308_v2  ;;  %p1172_p10 = pneg %p1171_p13 }
  0xc2   : > { %864 = vmatpush3.bf16.msra.mxu1 %v1042_v5  ;;  %p1178_p5 = por %p1177_p0, %p1176_p11 }
  0xc3   : > { %869 = vmatprep.subr.bf16.mxu1 %v1308_v2 }
  0xc4   : > { %888 = vmatpush3.bf16.msra.mxu0 %v1050_v14  ;;  %p1179_p8 = pnand %p1178_p5, %p1172_p10 }
  0xc5   : > { %866 = vmatmul.mubr.msk.bf16.vlgmr.msra.gmra.mrb[0].mxu1 %vm417_vm1, %v377_v6  ;;  %889 = vmatprep.subr.bf16.mxu0 %v1308_v2 }
  0xc6   : > { %870 = vmatpush3.bf16.msra.mxu1 %v1043_v7  ;;  %877 = vmatprep.mubr.msk.bf16.mxu1 %vm1309_vm0, %v1308_v2 }
  0xc7   : > { %871 = vmatprep.subr.bf16.mxu1 %v1308_v2 }
  0xc8   : > { %890 = vmatpush3.bf16.msra.mxu0 %v1051_v15 }
  0xc9   : > { %891 = vmatprep.subr.bf16.mxu0 %v1308_v2 }
  0xca   : > { %872 = vmatpush3.bf16.msra.mxu1 %v1044_v8 }
  0xcb   : > { %873 = vmatprep.subr.bf16.mxu1 %v1308_v2 }
  0xcc   : > { %892 = vmatpush3.bf16.msra.mxu0 %v1052_v16 }
  0xcd   : > { %893 = vmatprep.subr.bf16.mxu0 %v1308_v2 }
  0xce   : > { %874 = vmatpush3.bf16.msra.mxu1 %v1045_v9 }
  0xcf   : > { %875 = vmatprep.subr.bf16.mxu1 %v1308_v2 }
  0xd0   : > { %894 = vmatpush3.bf16.msra.mxu0 %v1053_v25 }
  0xd1   : > { %895 = vmatprep.subr.bf16.mxu0 %v1308_v2 }
  0xd2   : > { %876 = vmatpush3.bf16.msra.mxu1 %v1046_v10 }
  0xd4   : > { %896 = vmatpush3.bf16.msra.mxu0 %v1054_v26 }
 0x198   : > { %v455_v18 = vpop.f32.mrb[0].mxu1 }
 0x199   : > { %v456_v19 = vadd.f32 %v813_v17, %v455_v18  ;;  %v867_v20 = vpop.f32.mrb[1].mxu1 }
 0x19a   : > { %v458_v21 = vpop.f32.mrb[2].mxu1 }
 0x19b   : > { %v461_v22 = vmax.f32 %v456_v19, 0.0  ;;  %v868_v23 = vpop.f32.mrb[3].mxu1 }
 0x19d   : > { %v462_v24 = vpack.c.bf16 %v461_v22, %v461_v22 }
 0x19f   : > { %878 = vmatmul.mubr.msk.bf16.vlgmr.msra.gmra.mrb[4].mxu1 %vm417_vm1, %v462_v24 }
 0x272   : > { %v539_v28 = vpop.f32.mrb[4].mxu1 }
 0x273   : > { %v540_v29 = vadd.f32 %v819_v27, %v539_v28  ;;  %v879_v30 = vpop.f32.mrb[5].mxu1 }
 0x274   : > { %v542_v31 = vpop.f32.mrb[6].mxu1 }
 0x275   : > { %v545_v32 = vmax.f32 %v540_v29, 0.0  ;;  %v880_v33 = vpop.f32.mrb[7].mxu1 }
 0x277   : > { %v546_v34 = vpack.c.bf16 %v545_v32, %v545_v32 }
 0x279   : > { %898 = vmatmul.mubr.bf16.vlgmr.msra.gmra.mrb[0].mxu0 %v546_v34 }
 0x34c   : > { %v652_v36 = vpop.f32.mrb[0].mxu0 }
 0x34d   : > { %v653_v37 = vadd.f32 %v825_v35, %v652_v36  ;;  %v899_v38 = vpop.f32.mrb[1].mxu0 }
 0x34e   : > { %v655_v40 = vpop.f32.mrb[2].mxu0 }
 0x34f   : > { %v658_v41 = vmax.f32 %v653_v37, 0.0  ;;  %v900_v42 = vpop.f32.mrb[3].mxu0 }
 0x351   : > { %v661_v43 = vadd.f32 %v659_v39, %v658_v41 }
 0x353   : > { %662 = vst [vmem:[%s1610_s4] sm:$0xff] %v661_v43 }
 0x354   : > { %1182 = shalt.err (!%p1179_p8)
}
 0x355   : > { %s1183_s2 = scalar_lea.hbm %s1636_s18, 128  ;;  %s1187_s19 = scalar_lea.hbm %s1753_s3, 256 }
 0x356   : > { %p1184_p12 = scmp.ne.s32.totalorder %s1636_s18, %s1183_s2  ;;  %p1188_p7 = scmp.lt.u32.totalorder %s1636_s18, %s1753_s3 }
 0x357   : > { %p1189_p1 = scmp.lt.u32.totalorder %s1187_s19, %s1183_s2  ;;  %p1191_p4 = scmp.lt.u32.totalorder %s1183_s2, %s1636_s18 }
 0x358   : > { %p1185_p2 = pnand %p1184_p12, %p1754_p6 }
 0x359   : > { %p1190_p3 = por %p1189_p1, %p1188_p7 }
 0x35a   : > { %p1186_p9 = pneg %p1185_p2 }
 0x35b   : > { %p1192_p13 = por %p1191_p4, %p1190_p3 }
 0x35d   : > { %p1193_p10 = pnand %p1192_p13, %p1186_p9 }
 0x35f   : > { %1196 = shalt.err (!%p1193_p10)
}
 0x360   : > { %915 = dma.vmem_to_hbm [thread:$0]  (%p1754_p6), %s1638_s22, 128, %s1636_s18, %s664_s30  }
 0x361 PF: > { %s1755_s17 = sld [smem:[#allocation15_spill]]  ;;  %s1756_s13 = sld [smem:[#allocation18_spill]] }
 0x362   : > { %p942_p11 = scmp.ge.s32.totalorder %s1299_s11, 2 }
 0x367   : > { %s690_s23 = sand.u32 1, %s1755_s17   ;;  %p1757_p0 = scmp.ne.s32.totalorder %s1756_s13, 0 }
 0x368   : > { %s691_s1 = scalar_lea.sflag [#allocation4], %s690_s23 }
 0x369   : > { %p932_p5 = pnand %p942_p11, %p1757_p0 }
 0x36b   : > { %1254 = dma.done.wait (!%p932_p5), %s691_s1, 128  }
 0x36c   : > { %1256 = vsyncadd (!%p932_p5), %s691_s1, 4294967168  ;;  %s25_s11 = sadd.s32 1, %s1299_s11   ;;  %s1758_s12 = sld [smem:[#allocation19_spill]] }
 0x36d   : > { %p22_p8 = scmp.ge.s32.totalorder %s25_s11, 6   ;;  %s1759_s24 = smov %s1263_s25 }
 0x36e   : > { %s1760_s25 = smov %s1267_s26  ;;  %s1761_s26 = smov %s1543_s27 }
 0x36f   : > { %s1762_s27 = smov %s1275_s28  ;;  %s1763_s28 = smov %s1279_s29 }
 0x370   : > { %s1764_s29 = smov %s1546_s20  ;;  %s1765_s30 = smov %s1291_s9 }
 0x371   : > { %s1766_s8 = smov %s1295_s10  ;;  %s1768_s10 = smov %s1774_s21 }
 0x372   : > { %s1767_s9 = smov %s1758_s12  ;;  %24 = sbr.rel (!%p22_p8) target bundleno = 19 (0x13), region = 109 }
 0x379   :  { %696 = vsyncpa [#allocation3], 1 }
 0x37a   :  { %698 = vsyncpa [#allocation3 + $0x1], 1 }
 0x37b   :  { %699 = vsyncpa [#allocation6], 1 }
 0x37c   :  { %700 = vsyncpa [#allocation9], 1 }
 0x37d   :  { %701 = vsyncpa [#allocation4], 1 }
 0x37e   :  { %703 = vsyncpa [#allocation4 + $0x1], 1 }

</bundles_post_ra>
